<compile_context>
chip_gen: v7x
topology: tpu7x:2x2x1
jax: 0.10.0
libtpu: 0.0.40
codegen_flags: <defaults>
</compile_context>

<pallas_src>
import functools

import jax
import jax.numpy as jnp
from jax.experimental import pallas as pl
from jax.experimental.pallas import tpu as pltpu


def _round_up(x, m):
    return ((x + m - 1) // m) * m


def canonical_kernel(x_ref, te_ref, Wx_ref, bx_ref, Wt_ref, bt_ref,
                     Wo_ref, bo_ref, out_ref, *, n_ch, RP):
    """One batch tile of the fused Canonical aggregator forward pass.

    x_ref  : (tb, n_ch*in_size)        children features, lane-dense
    te_ref : (tb, t_size)              type embeddings
    Wx_ref : (n_ch*in_size, n_ch*RP)   block-diag of U_0..U_{n_ch-1}, each
                                       block zero-padded to RP (128-aligned)
    bx_ref : (1, n_ch*RP)              flattened child biases (zero pad lanes)
    Wt_ref : (t_size, RP)              U_type zero-padded to RP
    bt_ref : (1, RP)
    Wo_ref : (RP, NP)                  block-diag of U_out_a; pad rows/cols = 0
    bo_ref : (1, NP)
    out_ref: (tb, NP)                  NP = round_up(n_aggr*out_size, 128)
    """
    # One fused MXU pass for all per-child maps, one for the type gate.
    hc = jnp.dot(x_ref[...], Wx_ref[...],
                 preferred_element_type=jnp.float32) + bx_ref[...]     # (tb, n_ch*RP) f32
    ht = jnp.dot(te_ref[...], Wt_ref[...],
                 preferred_element_type=jnp.float32) + bt_ref[...]     # (tb, RP) f32

    # Product over the n_ch children, then the type gate (VPU).  Every slice
    # starts at a multiple of RP (>=128), i.e. on a lane-tile boundary -> free
    # views, no per-factor lane shuffles.  Product stays in f32.
    ris = hc[:, 0:RP]
    for c in range(1, n_ch):                                           # small static loop
        ris = ris * hc[:, c * RP:(c + 1) * RP]
    ris = ris * ht                                                     # (tb, RP)

    # Fused output projection for all aggregators (pad rows of Wo are zero, so
    # the padded lanes of `ris` never contribute), then ONE lane-dense store.
    out = jnp.dot(ris.astype(Wo_ref.dtype), Wo_ref[...],
                  preferred_element_type=jnp.float32) + bo_ref[...]    # (tb, NP)
    out_ref[...] = out.astype(out_ref.dtype)


def canonical_forward(x, type_embs, params, *, n_aggr, rank, tb=None,
                      use_bf16=False):
    """Wrapper: builds fused 128-aligned block-diagonal weights once and tiles
    the batch dimension.  `type_embs` is required (t_size path of the module).
    """
    U, b, U_type, b_type, U_out, b_out = params
    B, n_ch, in_size = x.shape
    t_size = type_embs.shape[1]
    out_size = U_out.shape[-1]
    R = n_aggr * rank
    RP = _round_up(R, 128)            # per-factor block width, lane-aligned
    n_out = n_aggr * out_size
    NP = _round_up(n_out, 128)        # lane-dense output width

    # ---- fused, lane-aligned weights (built once; grid-invariant) ----------
    U_pad = jnp.pad(U[:n_ch], ((0, 0), (0, 0), (0, RP - R)))           # (n_ch, in, RP)
    Wx = jax.scipy.linalg.block_diag(*[U_pad[c] for c in range(n_ch)])  # (n_ch*in, n_ch*RP)
    bx = jnp.pad(b[:n_ch, 0, :], ((0, 0), (0, RP - R))).reshape(1, n_ch * RP)
    Wt = jnp.pad(U_type, ((0, 0), (0, RP - R)))                         # (t, RP)
    bt = jnp.pad(b_type, ((0, 0), (0, RP - R)))                         # (1, RP)
    Wo = jnp.pad(jax.scipy.linalg.block_diag(*[U_out[a] for a in range(n_aggr)]),
                 ((0, RP - R), (0, NP - n_out)))                        # (RP, NP)
    bo = jnp.pad(b_out.reshape(1, n_out), ((0, 0), (0, NP - n_out)))    # (1, NP)

    # VMEM guard: the block-diagonal Wx is ~1/n_ch dense; if it grows toward
    # the v7x budget, drop weights/activations to bf16 automatically.
    # TODO(synk): for extreme n_ch*in_size*rank, fall back to a per-child
    # K-tiled grid (product accumulated in VMEM scratch with pl.when init).
    w_bytes_f32 = 4 * (Wx.size + Wt.size + Wo.size)
    if use_bf16 or w_bytes_f32 > (20 << 20):
        wdt = jnp.bfloat16
    else:
        wdt = jnp.float32

    # ---- activations: free reshape, no concatenate / pad copies ------------
    x2 = x.reshape(B, n_ch * in_size).astype(wdt)
    te = type_embs.astype(wdt)
    Wx, Wt, Wo = Wx.astype(wdt), Wt.astype(wdt), Wo.astype(wdt)
    # biases stay f32 (added to the f32 MXU accumulators)

    # ---- batch tile: big (amortize grid-step overhead, fill v6e MXU) but keep
    # >= 2 tiles when B allows so both v7x TensorCores get work; multiple of 128.
    if tb is None:
        tb = min(512, max(128, _round_up(pl.cdiv(B, 2), 128)))
    else:
        assert tb % 128 == 0, tb
    n_tiles = pl.cdiv(B, tb)          # partial last tile: OOB rows dropped on store

    # ---- explicit VMEM budget (single-buffered weights + pipelined I/O) -----
    itemsize = jnp.dtype(wdt).itemsize
    w_vmem = itemsize * (Wx.size + Wt.size + Wo.size) + 4 * (bx.size + bt.size + bo.size)
    io_vmem = 2 * tb * (itemsize * (n_ch * in_size + _round_up(t_size, 128)) + 4 * NP)
    vmem_limit = int(min(max(w_vmem + io_vmem + (8 << 20), 32 << 20), 64 << 20))

    def inv_spec(shape):
        # grid-invariant operand: constant index map + single buffer.
        return pl.BlockSpec(shape, lambda i: (0, 0), pipeline_mode=pl.Buffered(1))

    kernel = functools.partial(canonical_kernel, n_ch=n_ch, RP=RP)

    out = pl.pallas_call(
        kernel,
        out_shape=jax.ShapeDtypeStruct((B, NP), jnp.float32),
        grid_spec=pltpu.PrefetchScalarGridSpec(
            num_scalar_prefetch=0,
            grid=(n_tiles,),
            in_specs=[
                pl.BlockSpec((tb, n_ch * in_size), lambda i: (i, 0)),  # x tile
                pl.BlockSpec((tb, t_size), lambda i: (i, 0)),          # type-emb tile
                inv_spec(Wx.shape), inv_spec(bx.shape),
                inv_spec(Wt.shape), inv_spec(bt.shape),
                inv_spec(Wo.shape), inv_spec(bo.shape),
            ],
            out_specs=pl.BlockSpec((tb, NP), lambda i: (i, 0)),        # lane-dense store
        ),
        compiler_params=pltpu.CompilerParams(
            dimension_semantics=("parallel",),
            vmem_limit_bytes=vmem_limit),
    )(x2, te, Wx, bx, Wt, bt, Wo, bo)

    out = out[:, :n_out]                      # drop lane padding
    # Exact PyTorch epilogue: ris.squeeze(2).view(-1, n_aggr * in_size).
    return out.reshape(-1, n_aggr * in_size)


def xavier_uniform(key, shape):
    """Deterministic xavier-uniform-style init (fan from last two dims)."""
    fan_in = shape[-1]
    fan_out = shape[-2] if len(shape) > 1 else shape[-1]
    bound = (6.0 / (fan_in + fan_out)) ** 0.5
    return jax.random.uniform(key, shape, jnp.float32, -bound, bound)


def reference_forward(x, type_embs, params, *, n_aggr, rank):
    """Plain-JAX replica of the PyTorch forward for validation."""
    U, b, U_type, b_type, U_out, b_out = params
    B, n_ch, in_size = x.shape
    ris = jnp.einsum('bci,cir->bcr', x, U[:n_ch]) + b[None, :n_ch, 0, :]
    ris = jnp.prod(ris, axis=1)                                    # (B, R)
    ris = ris * (type_embs @ U_type + b_type)                      # (B, R)
    ris = ris.reshape(B, n_aggr, 1, rank)
    out = jnp.einsum('baxr,aro->baxo', ris, U_out) + b_out[None]   # (B, n_aggr, 1, out)
    return out[:, :, 0, :].reshape(-1, n_aggr * in_size)


if __name__ == "__main__":
    # Small shapes consistent with the module.  B is deliberately NOT a multiple
    # of the tile to exercise the partial-tail path; auto tb -> 128, grid = 2,
    # so both v7x TensorCores get a batch tile.
    B = 200                # batch
    n_ch = 4               # max_output_degree (number of children)
    in_size = 32
    out_size = 32
    rank = 16
    n_aggr = 2
    t_size = 8

    R = n_aggr * rank
    key = jax.random.PRNGKey(0)
    k = jax.random.split(key, 8)

    # Parameters (deterministic synthetic init; shapes from Canonical.__init__).
    U = xavier_uniform(k[0], (n_ch, in_size, R))
    b = xavier_uniform(k[1], (n_ch, 1, R))
    U_type = xavier_uniform(k[2], (t_size, R))
    b_type = xavier_uniform(k[3], (1, R))
    U_out = xavier_uniform(k[4], (n_aggr, rank, out_size))
    b_out = xavier_uniform(k[5], (n_aggr, 1, out_size))
    params = (U, b, U_type, b_type, U_out, b_out)

    # Inputs.
    x = jax.random.normal(k[6], (B, n_ch, in_size), jnp.float32)
    type_embs = jax.random.normal(k[7], (B, t_size), jnp.float32)

    fwd = jax.jit(functools.partial(canonical_forward, n_aggr=n_aggr, rank=rank))
    out = jax.block_until_ready(fwd(x, type_embs, params))

    ref = reference_forward(x, type_embs, params, n_aggr=n_aggr, rank=rank)
    assert out.shape == (B, n_aggr * in_size), out.shape
    max_err = float(jnp.max(jnp.abs(out - ref)))
    assert jnp.allclose(out, ref, atol=2e-3, rtol=2e-3), max_err

    print("KERNEL_OK")
</pallas_src>

<mosaic_0001>
module attributes {stable_mosaic.version = 11 : i64} {
  func.func @canonical_kernel(%arg0: i32, %arg1: memref<128x128xf32, #tpu.memory_space<vmem>>, %arg2: memref<128x8xf32, #tpu.memory_space<vmem>>, %arg3: memref<128x512xf32, #tpu.memory_space<vmem>>, %arg4: memref<1x512xf32, #tpu.memory_space<vmem>>, %arg5: memref<8x128xf32, #tpu.memory_space<vmem>>, %arg6: memref<1x128xf32, #tpu.memory_space<vmem>>, %arg7: memref<128x128xf32, #tpu.memory_space<vmem>>, %arg8: memref<1x128xf32, #tpu.memory_space<vmem>>, %arg9: memref<128x128xf32, #tpu.memory_space<vmem>>) attributes {dimension_semantics = [#tpu.dimension_semantics<parallel>], iteration_bounds = array<i64: 2>, scalar_prefetch = 0 : i64, scratch_operands = 0 : i64, tpu.core_type = #tpu.core_type<tc>, window_params = [{transform_indices = @transform_0, window_bounds = array<i64: 128, 128>}, {transform_indices = @transform_1, window_bounds = array<i64: 128, 8>}, {pipeline_mode = #tpu.pipeline_mode<synchronous>, transform_indices = @transform_2, window_bounds = array<i64: 128, 512>}, {pipeline_mode = #tpu.pipeline_mode<synchronous>, transform_indices = @transform_3, window_bounds = array<i64: 1, 512>}, {pipeline_mode = #tpu.pipeline_mode<synchronous>, transform_indices = @transform_4, window_bounds = array<i64: 8, 128>}, {pipeline_mode = #tpu.pipeline_mode<synchronous>, transform_indices = @transform_5, window_bounds = array<i64: 1, 128>}, {pipeline_mode = #tpu.pipeline_mode<synchronous>, transform_indices = @transform_6, window_bounds = array<i64: 128, 128>}, {pipeline_mode = #tpu.pipeline_mode<synchronous>, transform_indices = @transform_7, window_bounds = array<i64: 1, 128>}, {transform_indices = @transform_8, window_bounds = array<i64: 128, 128>}]} {
    %c0 = arith.constant 0 : index
    %c0_0 = arith.constant 0 : index
    %0 = vector.load %arg1[%c0, %c0_0] : memref<128x128xf32, #tpu.memory_space<vmem>>, vector<128x128xf32>
    %c0_1 = arith.constant 0 : index
    %c0_2 = arith.constant 0 : index
    %1 = vector.load %arg3[%c0_1, %c0_2] : memref<128x512xf32, #tpu.memory_space<vmem>>, vector<128x512xf32>
    %cst = arith.constant dense<0.000000e+00> : vector<128x512xf32>
    %2 = tpu.matmul %0, %1, %cst {dimension_numbers = #tpu.dot_dimension_numbers<[1], [0], [0], [1], [0, 0, 1, 1], [], []>} : vector<128x128xf32>, vector<128x512xf32>, vector<128x512xf32> -> vector<128x512xf32>
    %c0_3 = arith.constant 0 : index
    %c0_4 = arith.constant 0 : index
    %3 = vector.load %arg4[%c0_3, %c0_4] : memref<1x512xf32, #tpu.memory_space<vmem>>, vector<1x512xf32>
    %4 = vector.broadcast %3 : vector<1x512xf32> to vector<128x512xf32>
    %5 = arith.addf %2, %4 : vector<128x512xf32>
    %c0_5 = arith.constant 0 : index
    %c0_6 = arith.constant 0 : index
    %6 = vector.load %arg2[%c0_5, %c0_6] : memref<128x8xf32, #tpu.memory_space<vmem>>, vector<128x8xf32>
    %c0_7 = arith.constant 0 : index
    %c0_8 = arith.constant 0 : index
    %7 = vector.load %arg5[%c0_7, %c0_8] : memref<8x128xf32, #tpu.memory_space<vmem>>, vector<8x128xf32>
    %cst_9 = arith.constant dense<0.000000e+00> : vector<128x128xf32>
    %8 = tpu.matmul %6, %7, %cst_9 {dimension_numbers = #tpu.dot_dimension_numbers<[1], [0], [0], [1], [0, 0, 1, 1], [], []>} : vector<128x8xf32>, vector<8x128xf32>, vector<128x128xf32> -> vector<128x128xf32>
    %c0_10 = arith.constant 0 : index
    %c0_11 = arith.constant 0 : index
    %9 = vector.load %arg6[%c0_10, %c0_11] : memref<1x128xf32, #tpu.memory_space<vmem>>, vector<1x128xf32>
    %10 = vector.broadcast %9 : vector<1x128xf32> to vector<128x128xf32>
    %11 = arith.addf %8, %10 : vector<128x128xf32>
    %12 = vector.extract_strided_slice %5 {offsets = [0, 0], sizes = [128, 128], strides = [1, 1]} : vector<128x512xf32> to vector<128x128xf32>
    %13 = vector.extract_strided_slice %5 {offsets = [0, 128], sizes = [128, 128], strides = [1, 1]} : vector<128x512xf32> to vector<128x128xf32>
    %14 = arith.mulf %12, %13 : vector<128x128xf32>
    %15 = vector.extract_strided_slice %5 {offsets = [0, 256], sizes = [128, 128], strides = [1, 1]} : vector<128x512xf32> to vector<128x128xf32>
    %16 = arith.mulf %14, %15 : vector<128x128xf32>
    %17 = vector.extract_strided_slice %5 {offsets = [0, 384], sizes = [128, 128], strides = [1, 1]} : vector<128x512xf32> to vector<128x128xf32>
    %18 = arith.mulf %16, %17 : vector<128x128xf32>
    %19 = arith.mulf %18, %11 : vector<128x128xf32>
    %c0_12 = arith.constant 0 : index
    %c0_13 = arith.constant 0 : index
    %20 = vector.load %arg7[%c0_12, %c0_13] : memref<128x128xf32, #tpu.memory_space<vmem>>, vector<128x128xf32>
    %cst_14 = arith.constant dense<0.000000e+00> : vector<128x128xf32>
    %21 = tpu.matmul %19, %20, %cst_14 {dimension_numbers = #tpu.dot_dimension_numbers<[1], [0], [0], [1], [0, 0, 1, 1], [], []>} : vector<128x128xf32>, vector<128x128xf32>, vector<128x128xf32> -> vector<128x128xf32>
    %c0_15 = arith.constant 0 : index
    %c0_16 = arith.constant 0 : index
    %22 = vector.load %arg8[%c0_15, %c0_16] : memref<1x128xf32, #tpu.memory_space<vmem>>, vector<1x128xf32>
    %23 = vector.broadcast %22 : vector<1x128xf32> to vector<128x128xf32>
    %24 = arith.addf %21, %23 : vector<128x128xf32>
    %c0_17 = arith.constant 0 : index
    %c0_18 = arith.constant 0 : index
    %25 = vector.load %arg9[%c0_17, %c0_18] : memref<128x128xf32, #tpu.memory_space<vmem>>, vector<128x128xf32>
    tpu.vector_store %arg9[%c0_17, %c0_18], %24 {strides = array<i32>} : memref<128x128xf32, #tpu.memory_space<vmem>>, vector<128x128xf32>,
    return
  }
  func.func @transform_0(%arg0: i32) -> (i32, i32) {
    %c0_i32 = arith.constant 0 : i32
    %c0_i32_0 = arith.constant 0 : i32
    return %arg0, %c0_i32 : i32, i32
  }
  func.func @transform_1(%arg0: i32) -> (i32, i32) {
    %c0_i32 = arith.constant 0 : i32
    %c0_i32_0 = arith.constant 0 : i32
    return %arg0, %c0_i32 : i32, i32
  }
  func.func @transform_2(%arg0: i32) -> (i32, i32) {
    %c0_i32 = arith.constant 0 : i32
    %c0_i32_0 = arith.constant 0 : i32
    %c0_i32_1 = arith.constant 0 : i32
    return %c0_i32, %c0_i32_0 : i32, i32
  }
  func.func @transform_3(%arg0: i32) -> (i32, i32) {
    %c0_i32 = arith.constant 0 : i32
    %c0_i32_0 = arith.constant 0 : i32
    %c0_i32_1 = arith.constant 0 : i32
    return %c0_i32, %c0_i32_0 : i32, i32
  }
  func.func @transform_4(%arg0: i32) -> (i32, i32) {
    %c0_i32 = arith.constant 0 : i32
    %c0_i32_0 = arith.constant 0 : i32
    %c0_i32_1 = arith.constant 0 : i32
    return %c0_i32, %c0_i32_0 : i32, i32
  }
  func.func @transform_5(%arg0: i32) -> (i32, i32) {
    %c0_i32 = arith.constant 0 : i32
    %c0_i32_0 = arith.constant 0 : i32
    %c0_i32_1 = arith.constant 0 : i32
    return %c0_i32, %c0_i32_0 : i32, i32
  }
  func.func @transform_6(%arg0: i32) -> (i32, i32) {
    %c0_i32 = arith.constant 0 : i32
    %c0_i32_0 = arith.constant 0 : i32
    %c0_i32_1 = arith.constant 0 : i32
    return %c0_i32, %c0_i32_0 : i32, i32
  }
  func.func @transform_7(%arg0: i32) -> (i32, i32) {
    %c0_i32 = arith.constant 0 : i32
    %c0_i32_0 = arith.constant 0 : i32
    %c0_i32_1 = arith.constant 0 : i32
    return %c0_i32, %c0_i32_0 : i32, i32
  }
  func.func @transform_8(%arg0: i32) -> (i32, i32) {
    %c0_i32 = arith.constant 0 : i32
    %c0_i32_0 = arith.constant 0 : i32
    return %arg0, %c0_i32 : i32, i32
  }
}

</mosaic_0001>

<bundles_post_ra>
// kernel: canonical_forward.1
= control target key start
LH: loop header
LB: loop body
LE: loop exit
PB: predicated region body
PF: predicated region fallthrough
CT: control target
= control target key end

     0   :  { %s2043_s27 = smov 0   ;;  %s2045_s28 = smov 0   ;;  %s2682_s0 = inlined_call_operand.vmem [shape: f32[200,128], index: 0, kind: input, shape index: {}]   ;;  %s2683_s1 = inlined_call_operand.vmem [shape: f32[200,8], index: 1, kind: input, shape index: {}]   ;;  %s2684_s2 = inlined_call_operand.vmem [shape: f32[128,512], index: 2, kind: input, shape index: {}]   ;;  %s2685_s3 = inlined_call_operand.vmem [shape: f32[1,512], index: 3, kind: input, shape index: {}]   ;;  %s2686_s4 = inlined_call_operand.vmem [shape: f32[8,128], index: 4, kind: input, shape index: {}]   ;;  %s2687_s5 = inlined_call_operand.vmem [shape: f32[1,128], index: 5, kind: input, shape index: {}]   ;;  %s2688_s6 = inlined_call_operand.vmem [shape: f32[128,128], index: 6, kind: input, shape index: {}]   ;;  %s2689_s7 = inlined_call_operand.vmem [shape: f32[1,128], index: 7, kind: input, shape index: {}]   ;;  %s2690_s8 = inlined_call_operand.vmem [shape: f32[200,128], index: 8, kind: output, shape index: {}]  }
   0x1   :  { %s2047_s29 = smov 0  }
   0x2 LB: > { %s2056_s30 = sadd.s32 4294967295, %s1963_s29   ;;  %s2058_s9 = sadd.s32 1, %s1963_s29   ;;  %s1963_s29 = sphi %s2047_s29, %s2697_s29   ;;  %s1959_s28 = sphi %s2045_s28, %s2696_s28   ;;  %s1955_s27 = sphi %s2043_s27, %s2695_s27  }
   0x3   : > { %s200_s10 = ssub.s32 %s1963_s29, %s2058_s9  ;;  %s203_s11 = sadd.s32 1, %s1959_s28 }
   0x4   : > { %p201_p0 = scmp.eq.s32.totalorder %s200_s10, 0  ;;  %p213_p1 = scmp.ne.s32.totalorder %s1959_s28, %s1955_s27 }
   0x5   : > { %p214_p2 = scmp.eq.s32.totalorder %s2056_s30, 1  ;;  %p1549_p3 = scmp.ge.s32.totalorder %s1963_s29, 1 }
   0x6   : > { %s2066_s12 = scalar_select %p201_p0, %s1959_s28, %s203_s11  }
   0x7   : > { %p2068_p4 = por %p214_p2, %p213_p1  ;;  %p290_p5 = scmp.lt.s32.totalorder %s1963_s29, 3 }
   0x9   : > { %p291_p6 = pnand %p1549_p3, %p290_p5 }
   0xa   : > { %v386_v0 = vld [vmem:[%s2684_s2 + $0x8] sm:$0xff] (!%p291_p6)  ;;  %v385_v2 = vld [vmem:[%s2684_s2] sm:$0xff] (!%p291_p6)  ;;  %v388_v5 = vld [vmem:[%s2684_s2 + $0x18] sm:$0xff] (!%p291_p6)  ;;  %v1997_v7 = vmov (!%p291_p6), 0.0   ;;  %s2201_s18 = sshll.u32 (!%p291_p6), %s2056_s30, 4  ;;  %vm817_vm0 = vcmask (!%p291_p6), 64512  }
   0xb   : > { %294 = sbr.rel (%p291_p6) target bundleno = 621 (0x26d), region = 52  ;;  %v390_v1 = vld [vmem:[%s2684_s2 + $0x28] sm:$0xff] (!%p291_p6)  ;;  %v389_v4 = vld [vmem:[%s2684_s2 + $0x20] sm:$0xff] (!%p291_p6)  ;;  %v392_v6 = vld [vmem:[%s2684_s2 + $0x38] sm:$0xff] (!%p291_p6)  ;;  %535 = vmatprep.mubr.f32.mxu0 (!%p291_p6), %v1997_v7  ;;  %696 = vmatprep.mubr.f32.mxu1 (!%p291_p6), %v1997_v7  ;;  %p341_p7 = scmp.lt.s32.totalorder (!%p291_p6), %s2201_s18, 24 }
   0xc   : > { %v1724_v3 = vpack.c.bf16 (!%p291_p6), %v390_v1, %v386_v0  ;;  %v1726_v8 = vpack.c.bf16 (!%p291_p6), %v389_v4, %v385_v2  ;;  %v1756_v9 = vpack.c.bf16 (!%p291_p6), %v392_v6, %v388_v5  ;;  %v394_v10 = vld [vmem:[%s2684_s2 + $0x48] sm:$0xff] (!%p291_p6)  ;;  %v387_v12 = vld [vmem:[%s2684_s2 + $0x10] sm:$0xff] (!%p291_p6)  ;;  %v393_v15 = vld [vmem:[%s2684_s2 + $0x40] sm:$0xff] (!%p291_p6)  ;;  %s333_s20 = sand.u32 (!%p291_p6), 1, %s1955_s27  }
   0xd   : > { %v398_v11 = vld [vmem:[%s2684_s2 + $0x68] sm:$0xff] (!%p291_p6)  ;;  %v391_v14 = vld [vmem:[%s2684_s2 + $0x30] sm:$0xff] (!%p291_p6)  ;;  %v397_v16 = vld [vmem:[%s2684_s2 + $0x60] sm:$0xff] (!%p291_p6)  ;;  %s1550_s21 = sshll.u32 (!%p291_p6), %s333_s20, 7 }
   0xe   : > { %1725 = vmatprep.subr.bf16.mxu0 (!%p291_p6), %v1724_v3  ;;  %v1728_v13 = vpack.c.bf16 (!%p291_p6), %v398_v11, %v394_v10  ;;  %1757 = vmatprep.subr.bf16.mxu1 (!%p291_p6), %v1756_v9  ;;  %v1758_v17 = vpack.c.bf16 (!%p291_p6), %v391_v14, %v387_v12  ;;  %v1730_v18 = vpack.c.bf16 (!%p291_p6), %v397_v16, %v393_v15  ;;  %v396_v19 = vld [vmem:[%s2684_s2 + $0x58] sm:$0xff] (!%p291_p6)  ;;  %v402_v21 = vld [vmem:[%s2684_s2 + $0x88] sm:$0xff] (!%p291_p6)  ;;  %v395_v24 = vld [vmem:[%s2684_s2 + $0x50] sm:$0xff] (!%p291_p6)  ;;  %s2564_s24 = scalar_lea.vmem (!%p291_p6), [#allocation2], %s1550_s21  }
   0xf   : > { %1727 = vmatpush1.bf16.msra.mxu0 (!%p291_p6), %v1726_v8  ;;  %v400_v20 = vld [vmem:[%s2684_s2 + $0x78] sm:$0xff] (!%p291_p6)  ;;  %v406_v23 = vld [vmem:[%s2684_s2 + $0xa8] sm:$0xff] (!%p291_p6)  ;;  %v399_v25 = vld [vmem:[%s2684_s2 + $0x70] sm:$0xff] (!%p291_p6) }
  0x10   : > { %1729 = vmatprep.subr.bf16.mxu0 (!%p291_p6), %v1728_v13  ;;  %v1760_v22 = vpack.c.bf16 (!%p291_p6), %v400_v20, %v396_v19  ;;  %1759 = vmatpush1.bf16.msra.mxu1 (!%p291_p6), %v1758_v17  ;;  %v1732_v26 = vpack.c.bf16 (!%p291_p6), %v406_v23, %v402_v21  ;;  %v1762_v27 = vpack.c.bf16 (!%p291_p6), %v399_v25, %v395_v24  ;;  %v401_v28 = vld [vmem:[%s2684_s2 + $0x80] sm:$0xff] (!%p291_p6)  ;;  %v404_v30 = vld [vmem:[%s2684_s2 + $0x98] sm:$0xff] (!%p291_p6)  ;;  %v410_v32 = vld [vmem:[%s2684_s2 + $0xc8] sm:$0xff] (!%p291_p6) }
  0x11   : > { %v405_v29 = vld [vmem:[%s2684_s2 + $0xa0] sm:$0xff] (!%p291_p6)  ;;  %v408_v31 = vld [vmem:[%s2684_s2 + $0xb8] sm:$0xff] (!%p291_p6)  ;;  %v414_v33 = vld [vmem:[%s2684_s2 + $0xe8] sm:$0xff] (!%p291_p6) }
  0x12   : > { %1761 = vmatprep.subr.bf16.mxu1 %v1760_v22  ;;  %v1734_v34 = vpack.c.bf16 %v405_v29, %v401_v28  ;;  %v1764_v35 = vpack.c.bf16 %v408_v31, %v404_v30  ;;  %v403_v36 = vld [vmem:[%s2684_s2 + $0x90] sm:$0xff]  ;;  %v409_v38 = vld [vmem:[%s2684_s2 + $0xc0] sm:$0xff]  ;;  %v1736_v39 = vpack.c.bf16 %v414_v33, %v410_v32  ;;  %v412_v41 = vld [vmem:[%s2684_s2 + $0xd8] sm:$0xff]  ;;  %s2249_s16 = scalar_select %p341_p7, %s2201_s18, 24 }
  0x13   : > { %1731 = vmatpush1.bf16.msra.mxu0 %v1730_v18  ;;  %v407_v37 = vld [vmem:[%s2684_s2 + $0xb0] sm:$0xff]  ;;  %v413_v40 = vld [vmem:[%s2684_s2 + $0xe0] sm:$0xff]  ;;  %v416_v42 = vld [vmem:[%s2684_s2 + $0xf8] sm:$0xff]  ;;  %s1267_s27 = ssub.s32 (%p2068_p4), 25, %s2201_s18  ;;  %s1590_s25 = sshll.u32 (%p2068_p4), %s2056_s30, 7 }
  0x14   : > { %1733 = vmatprep.subr.bf16.mxu0 %v1732_v26  ;;  %1763 = vmatpush1.bf16.msra.mxu1 %v1762_v27  ;;  %v1766_v43 = vpack.c.bf16 %v407_v37, %v403_v36  ;;  %v418_v44 = vld [vmem:[%s2684_s2 + $0x108] sm:$0xff]  ;;  %v1768_v46 = vpack.c.bf16 %v416_v42, %v412_v41  ;;  %v411_v47 = vld [vmem:[%s2684_s2 + $0xd0] sm:$0xff]  ;;  %v1738_v49 = vpack.c.bf16 %v413_v40, %v409_v38  ;;  %v420_v50 = vld [vmem:[%s2684_s2 + $0x118] sm:$0xff]  ;;  %s1552_s14 = sshll.u32 %s2249_s16, 3  ;;  %p1268_p8 = scmp.lt.s32.totalorder (%p2068_p4), %s1267_s27, 16 }
  0x15   : > { %v422_v45 = vld [vmem:[%s2684_s2 + $0x128] sm:$0xff]  ;;  %1765 = vmatprep.subr.bf16.mxu1 %v1764_v35  ;;  %v415_v48 = vld [vmem:[%s2684_s2 + $0xf0] sm:$0xff]  ;;  %v424_v51 = vld [vmem:[%s2684_s2 + $0x138] sm:$0xff]  ;;  %s2281_s23 = scalar_lea.vmem %s2682_s0, %s1552_s14  ;;  %s2334_s10 = scalar_lea.vmem %s2683_s1, %s1552_s14 }
  0x16   : > { %v1740_v52 = vpack.c.bf16 %v422_v45, %v418_v44  ;;  %v417_v53 = vld [vmem:[%s2684_s2 + $0x100] sm:$0xff]  ;;  %v1770_v55 = vpack.c.bf16 %v415_v48, %v411_v47  ;;  %v426_v56 = vld [vmem:[%s2684_s2 + $0x148] sm:$0xff]  ;;  %v1772_v58 = vpack.c.bf16 %v424_v51, %v420_v50  ;;  %v419_v59 = vld [vmem:[%s2684_s2 + $0x110] sm:$0xff] }
  0x17   : > { %1735 = vmatpush1.bf16.msra.mxu0 %v1734_v34  ;;  %v421_v54 = vld [vmem:[%s2684_s2 + $0x120] sm:$0xff]  ;;  %v430_v57 = vld [vmem:[%s2684_s2 + $0x168] sm:$0xff]  ;;  %v423_v60 = vld [vmem:[%s2684_s2 + $0x130] sm:$0xff] }
  0x18   : > { %1737 = vmatprep.subr.bf16.mxu0 %v1736_v39  ;;  %1767 = vmatpush1.bf16.msra.mxu1 %v1766_v43  ;;  %v1742_v61 = vpack.c.bf16 %v421_v54, %v417_v53  ;;  %v428_v62 = vld [vmem:[%s2684_s2 + $0x158] sm:$0xff]  ;;  %v1744_v0 = vpack.c.bf16 %v430_v57, %v426_v56  ;;  %v425_v1 = vld [vmem:[%s2684_s2 + $0x140] sm:$0xff]  ;;  %v1774_v3 = vpack.c.bf16 %v423_v60, %v419_v59  ;;  %v434_v4 = vld [vmem:[%s2684_s2 + $0x188] sm:$0xff] }
  0x19   : > { %1769 = vmatprep.subr.bf16.mxu1 %v1768_v46  ;;  %v432_v63 = vld [vmem:[%s2684_s2 + $0x178] sm:$0xff]  ;;  %v429_v2 = vld [vmem:[%s2684_s2 + $0x160] sm:$0xff]  ;;  %v438_v5 = vld [vmem:[%s2684_s2 + $0x1a8] sm:$0xff] }
  0x1a   : > { %v1776_v6 = vpack.c.bf16 %v432_v63, %v428_v62  ;;  %v427_v8 = vld [vmem:[%s2684_s2 + $0x150] sm:$0xff]  ;;  %v1746_v10 = vpack.c.bf16 %v429_v2, %v425_v1  ;;  %v436_v11 = vld [vmem:[%s2684_s2 + $0x198] sm:$0xff]  ;;  %v1748_v13 = vpack.c.bf16 %v438_v5, %v434_v4  ;;  %v433_v14 = vld [vmem:[%s2684_s2 + $0x180] sm:$0xff] }
  0x1b   : > { %1739 = vmatpush1.bf16.msra.mxu0 %v1738_v49  ;;  %v431_v9 = vld [vmem:[%s2684_s2 + $0x170] sm:$0xff]  ;;  %v440_v12 = vld [vmem:[%s2684_s2 + $0x1b8] sm:$0xff]  ;;  %v437_v15 = vld [vmem:[%s2684_s2 + $0x1a0] sm:$0xff] }
  0x1c   : > { %1741 = vmatprep.subr.bf16.mxu0 %v1740_v52  ;;  %1771 = vmatpush1.bf16.msra.mxu1 %v1770_v55  ;;  %v1778_v16 = vpack.c.bf16 %v431_v9, %v427_v8  ;;  %v442_v17 = vld [vmem:[%s2684_s2 + $0x1c8] sm:$0xff]  ;;  %v1780_v19 = vpack.c.bf16 %v440_v12, %v436_v11  ;;  %v435_v20 = vld [vmem:[%s2684_s2 + $0x190] sm:$0xff]  ;;  %v1750_v22 = vpack.c.bf16 %v437_v15, %v433_v14  ;;  %v444_v23 = vld [vmem:[%s2684_s2 + $0x1d8] sm:$0xff] }
  0x1d   : > { %1773 = vmatprep.subr.bf16.mxu1 %v1772_v58  ;;  %v446_v18 = vld [vmem:[%s2684_s2 + $0x1e8] sm:$0xff]  ;;  %v439_v21 = vld [vmem:[%s2684_s2 + $0x1b0] sm:$0xff]  ;;  %v448_v24 = vld [vmem:[%s2684_s2 + $0x1f8] sm:$0xff] }
  0x1e   : > { %v1752_v25 = vpack.c.bf16 %v446_v18, %v442_v17  ;;  %v441_v26 = vld [vmem:[%s2684_s2 + $0x1c0] sm:$0xff]  ;;  %v1782_v28 = vpack.c.bf16 %v439_v21, %v435_v20  ;;  %v1784_v29 = vpack.c.bf16 %v448_v24, %v444_v23  ;;  %v443_v30 = vld [vmem:[%s2684_s2 + $0x1d0] sm:$0xff]  ;;  %v370_v36 = vld [vmem:[%s2281_s23 + $0x8] sm:$0xff] }
  0x1f   : > { %1743 = vmatpush1.bf16.msra.mxu0 %v1742_v61  ;;  %v445_v27 = vld [vmem:[%s2684_s2 + $0x1e0] sm:$0xff]  ;;  %v447_v31 = vld [vmem:[%s2684_s2 + $0x1f0] sm:$0xff]  ;;  %v372_v38 = vld [vmem:[%s2281_s23 + $0x18] sm:$0xff] }
  0x20   : > { %1745 = vmatprep.subr.bf16.mxu0 %v1744_v0  ;;  %1775 = vmatpush1.bf16.msra.mxu1 %v1774_v3  ;;  %v1754_v32 = vpack.c.bf16 %v445_v27, %v441_v26  ;;  %v1786_v33 = vpack.c.bf16 %v447_v31, %v443_v30  ;;  %v809_v34 = vld [vmem:[%s2686_s4] sm:$0xff]  ;;  %v371_v37 = vld [vmem:[%s2281_s23 + $0x10] sm:$0xff]  ;;  %v374_v40 = vld [vmem:[%s2281_s23 + $0x28] sm:$0xff]  ;;  %v451_v27 = vlaneseq }
  0x21   : > { %1777 = vmatprep.subr.bf16.mxu1 %v1776_v6  ;;  %v369_v35 = vld [vmem:[%s2281_s23] sm:$0xff]  ;;  %v375_v41 = vld [vmem:[%s2281_s23 + $0x30] sm:$0xff]  ;;  %v376_v42 = vld [vmem:[%s2281_s23 + $0x38] sm:$0xff] }
  0x22   : > { %v373_v39 = vld [vmem:[%s2281_s23 + $0x20] sm:$0xff]  ;;  %v378_v44 = vld [vmem:[%s2281_s23 + $0x48] sm:$0xff]  ;;  %v379_v45 = vld [vmem:[%s2281_s23 + $0x50] sm:$0xff] }
  0x23   : > { %1747 = vmatpush1.bf16.msra.mxu0 %v1746_v10  ;;  %v377_v43 = vld [vmem:[%s2281_s23 + $0x40] sm:$0xff]  ;;  %v380_v46 = vld [vmem:[%s2281_s23 + $0x58] sm:$0xff]  ;;  %v382_v48 = vld [vmem:[%s2281_s23 + $0x68] sm:$0xff] }
  0x24   : > { %1749 = vmatprep.subr.bf16.mxu0 %v1748_v13  ;;  %1779 = vmatpush1.bf16.msra.mxu1 %v1778_v16  ;;  %v381_v47 = vld [vmem:[%s2281_s23 + $0x60] sm:$0xff]  ;;  %v383_v49 = vld [vmem:[%s2281_s23 + $0x70] sm:$0xff]  ;;  %v384_v50 = vld [vmem:[%s2281_s23 + $0x78] sm:$0xff] }
  0x25   : > { %1781 = vmatprep.subr.bf16.mxu1 %v1780_v19  ;;  %v793_v51 = vld [vmem:[%s2334_s10] sm:$0xff]  ;;  %v794_v52 = vld [vmem:[%s2334_s10 + $0x8] sm:$0xff]  ;;  %v795_v53 = vld [vmem:[%s2334_s10 + $0x10] sm:$0xff] }
  0x26   : > { %v796_v54 = vld [vmem:[%s2334_s10 + $0x18] sm:$0xff]  ;;  %v797_v55 = vld [vmem:[%s2334_s10 + $0x20] sm:$0xff]  ;;  %v799_v56 = vld [vmem:[%s2334_s10 + $0x30] sm:$0xff] }
  0x27   : > { %1751 = vmatpush1.bf16.msra.mxu0 %v1750_v22  ;;  %v800_v57 = vld [vmem:[%s2334_s10 + $0x38] sm:$0xff]  ;;  %v801_v58 = vld [vmem:[%s2334_s10 + $0x40] sm:$0xff]  ;;  %v802_v59 = vld [vmem:[%s2334_s10 + $0x48] sm:$0xff] }
  0x28   : > { %1753 = vmatprep.subr.bf16.mxu0 %v1752_v25  ;;  %1783 = vmatpush1.bf16.msra.mxu1 %v1782_v28  ;;  %v803_v60 = vld [vmem:[%s2334_s10 + $0x50] sm:$0xff]  ;;  %v804_v61 = vld [vmem:[%s2334_s10 + $0x58] sm:$0xff]  ;;  %v805_v62 = vld [vmem:[%s2334_s10 + $0x60] sm:$0xff]  ;;  %v452_v28 = vshrl.u32 %v451_v27, 7 }
  0x29   : > { %1785 = vmatprep.subr.bf16.mxu1 %v1784_v29  ;;  %v806_v63 = vld [vmem:[%s2334_s10 + $0x68] sm:$0xff]  ;;  %v807_v0 = vld [vmem:[%s2334_s10 + $0x70] sm:$0xff]  ;;  %v808_v1 = vld [vmem:[%s2334_s10 + $0x78] sm:$0xff] }
  0x2a   : > { %v1075_v2 = vld [vmem:[%s2688_s6] sm:$0xff]  ;;  %v1076_v3 = vld [vmem:[%s2688_s6 + $0x8] sm:$0xff]  ;;  %v1077_v5 = vld [vmem:[%s2688_s6 + $0x10] sm:$0xff]  ;;  %v453_v29 = vsub.s32 0, %v452_v28  ;;  %v457_v31 = vsub.s32 1, %v452_v28 }
  0x2b   : > { %1755 = vmatpush1.bf16.msra.mxu0 %v1754_v32  ;;  %v1788_v4 = vpack.c.bf16 %v1076_v3, %v1075_v2  ;;  %v1078_v6 = vld [vmem:[%s2688_s6 + $0x18] sm:$0xff]  ;;  %v1079_v9 = vld [vmem:[%s2688_s6 + $0x20] sm:$0xff]  ;;  %v1080_v10 = vld [vmem:[%s2688_s6 + $0x28] sm:$0xff]  ;;  %v461_v32 = vsub.s32 2, %v452_v28 }
  0x2c   : > { %1642 = vmatprep.subr.mxu0 %v809_v34  ;;  %1787 = vmatpush1.bf16.msra.mxu1 %v1786_v33  ;;  %v1792_v8 = vpack.c.bf16 %v1078_v6, %v1077_v5  ;;  %v1796_v11 = vpack.c.bf16 %v1080_v10, %v1079_v9  ;;  %v1081_v12 = vld [vmem:[%s2688_s6 + $0x30] sm:$0xff]  ;;  %v1082_v13 = vld [vmem:[%s2688_s6 + $0x38] sm:$0xff]  ;;  %v1083_v15 = vld [vmem:[%s2688_s6 + $0x40] sm:$0xff]  ;;  %v465_v33 = vsub.s32 3, %v452_v28 }
  0x2d   : > { %1789 = vmatprep.subr.bf16.mxu1 %v1788_v4  ;;  %v1800_v14 = vpack.c.bf16 %v1082_v13, %v1081_v12  ;;  %v1084_v16 = vld [vmem:[%s2688_s6 + $0x48] sm:$0xff]  ;;  %v1085_v18 = vld [vmem:[%s2688_s6 + $0x50] sm:$0xff]  ;;  %v1086_v19 = vld [vmem:[%s2688_s6 + $0x58] sm:$0xff] }
  0x2e   : > { %536 = vmatmul.mubr.f32.vlgmr.msra.gmra.mrb[0].mxu0 %v369_v35  ;;  %v1804_v17 = vpack.c.bf16 %v1084_v16, %v1083_v15  ;;  %v1808_v20 = vpack.c.bf16 %v1086_v19, %v1085_v18  ;;  %v1087_v21 = vld [vmem:[%s2688_s6 + $0x60] sm:$0xff]  ;;  %v1088_v22 = vld [vmem:[%s2688_s6 + $0x68] sm:$0xff]  ;;  %v1089_v24 = vld [vmem:[%s2688_s6 + $0x70] sm:$0xff] }
  0x2f   : > { %1643 = vmatpush3.msra.mxu0 %v809_v34  ;;  %541 = vmatprep.mubr.f32.mxu0 %v1997_v7  ;;  %v1812_v23 = vpack.c.bf16 %v1088_v22, %v1087_v21  ;;  %v1090_v25 = vld [vmem:[%s2688_s6 + $0x78] sm:$0xff]  ;;  %v449_v30 = vld [vmem:[%s2685_s3] sm:$0xf] }
  0x30   : > { %697 = vmatmul.mubr.f32.vlgmr.msra.gmra.mrb[0].mxu1 %v369_v35  ;;  %v1816_v26 = vpack.c.bf16 %v1090_v25, %v1089_v24  ;;  %v2422_v34 = vrot.slane %v449_v30, %v453_v29  ;;  %v2424_v35 = vrot.slane %v449_v30, %v457_v31 }
  0x31   : > { %702 = vmatprep.mubr.f32.mxu1 %v1997_v7  ;;  %1791 = vmatpush3.bf16.msra.mxu1 %v1788_v4 }
  0x32   : > { %542 = vmatmul.mubr.f32.gmra.mrb[2].mxu0 %v370_v36  ;;  %1793 = vmatprep.subr.bf16.mxu1 %v1792_v8 }
  0x33   : > { %547 = vmatprep.mubr.f32.mxu0 %v1997_v7 }
  0x34   : > { %703 = vmatmul.mubr.f32.gmra.mrb[2].mxu1 %v370_v36  ;;  %v2426_v36 = vrot.slane %v449_v30, %v461_v32 }
  0x35   : > { %708 = vmatprep.mubr.f32.mxu1 %v1997_v7  ;;  %1795 = vmatpush3.bf16.msra.mxu1 %v1792_v8 }
  0x36   : > { %548 = vmatmul.mubr.f32.gmra.mrb[4].mxu0 %v371_v37  ;;  %1797 = vmatprep.subr.bf16.mxu1 %v1796_v11 }
  0x37   : > { %553 = vmatprep.mubr.f32.mxu0 %v1997_v7 }
  0x38   : > { %709 = vmatmul.mubr.f32.gmra.mrb[4].mxu1 %v371_v37 }
  0x39   : > { %714 = vmatprep.mubr.f32.mxu1 %v1997_v7  ;;  %1799 = vmatpush3.bf16.msra.mxu1 %v1796_v11 }
  0x3a   : > { %554 = vmatmul.mubr.f32.gmra.mrb[6].mxu0 %v372_v38  ;;  %1801 = vmatprep.subr.bf16.mxu1 %v1800_v14 }
  0x3b   : > { %559 = vmatprep.mubr.f32.mxu0 %v1997_v7 }
  0x3c   : > { %715 = vmatmul.mubr.f32.gmra.mrb[6].mxu1 %v372_v38  ;;  %v2428_v38 = vrot.slane %v449_v30, %v465_v33 }
  0x3d   : > { %720 = vmatprep.mubr.f32.mxu1 %v1997_v7  ;;  %1803 = vmatpush3.bf16.msra.mxu1 %v1800_v14 }
  0x3e   : > { %560 = vmatmul.mubr.f32.gmra.mrb[8].mxu0 %v373_v39  ;;  %1805 = vmatprep.subr.bf16.mxu1 %v1804_v17 }
  0x3f   : > { %565 = vmatprep.mubr.f32.mxu0 %v1997_v7 }
  0x40   : > { %721 = vmatmul.mubr.f32.gmra.mrb[8].mxu1 %v373_v39 }
  0x41   : > { %726 = vmatprep.mubr.f32.mxu1 %v1997_v7  ;;  %1807 = vmatpush3.bf16.msra.mxu1 %v1804_v17 }
  0x42   : > { %566 = vmatmul.mubr.f32.gmra.mrb[10].mxu0 %v374_v40  ;;  %1809 = vmatprep.subr.bf16.mxu1 %v1808_v20 }
  0x43   : > { %571 = vmatprep.mubr.f32.mxu0 %v1997_v7 }
  0x44   : > { %727 = vmatmul.mubr.f32.gmra.mrb[10].mxu1 %v374_v40 }
  0x45   : > { %732 = vmatprep.mubr.f32.mxu1 %v1997_v7  ;;  %1811 = vmatpush3.bf16.msra.mxu1 %v1808_v20 }
  0x46   : > { %572 = vmatmul.mubr.f32.gmra.mrb[12].mxu0 %v375_v41  ;;  %1813 = vmatprep.subr.bf16.mxu1 %v1812_v23 }
  0x47   : > { %577 = vmatprep.mubr.f32.mxu0 %v1997_v7 }
  0x48   : > { %733 = vmatmul.mubr.f32.gmra.mrb[12].mxu1 %v375_v41 }
  0x49   : > { %738 = vmatprep.mubr.f32.mxu1 %v1997_v7  ;;  %1815 = vmatpush3.bf16.msra.mxu1 %v1812_v23 }
  0x4a   : > { %578 = vmatmul.mubr.f32.gmra.mrb[14].mxu0 %v376_v42  ;;  %1817 = vmatprep.subr.bf16.mxu1 %v1816_v26 }
  0x4b   : > { %583 = vmatprep.mubr.f32.mxu0 %v1997_v7 }
  0x4c   : > { %739 = vmatmul.mubr.f32.gmra.mrb[14].mxu1 %v376_v42 }
  0x4d   : > { %744 = vmatprep.mubr.f32.mxu1 %v1997_v7  ;;  %1819 = vmatpush3.bf16.msra.mxu1 %v1816_v26 }
  0x4e   : > { %584 = vmatmul.mubr.f32.gmra.mrb[16].mxu0 %v377_v43 }
  0x4f   : > { %589 = vmatprep.mubr.f32.mxu0 %v1997_v7 }
  0x50   : > { %745 = vmatmul.mubr.f32.gmra.mrb[16].mxu1 %v377_v43 }
  0x51   : > { %750 = vmatprep.mubr.f32.mxu1 %v1997_v7 }
  0x52   : > { %590 = vmatmul.mubr.f32.gmra.mrb[18].mxu0 %v378_v44 }
  0x53   : > { %595 = vmatprep.mubr.f32.mxu0 %v1997_v7 }
  0x54   : > { %751 = vmatmul.mubr.f32.gmra.mrb[18].mxu1 %v378_v44 }
  0x55   : > { %756 = vmatprep.mubr.f32.mxu1 %v1997_v7 }
  0x56   : > { %596 = vmatmul.mubr.f32.gmra.mrb[20].mxu0 %v379_v45 }
  0x57   : > { %601 = vmatprep.mubr.f32.mxu0 %v1997_v7 }
  0x58   : > { %757 = vmatmul.mubr.f32.gmra.mrb[20].mxu1 %v379_v45 }
  0x59   : > { %762 = vmatprep.mubr.f32.mxu1 %v1997_v7 }
  0x5a   : > { %602 = vmatmul.mubr.f32.gmra.mrb[22].mxu0 %v380_v46 }
  0x5b   : > { %607 = vmatprep.mubr.f32.mxu0 %v1997_v7 }
  0x5c   : > { %763 = vmatmul.mubr.f32.gmra.mrb[22].mxu1 %v380_v46 }
  0x5d   : > { %768 = vmatprep.mubr.f32.mxu1 %v1997_v7 }
  0x5e   : > { %608 = vmatmul.mubr.f32.gmra.mrb[24].mxu0 %v381_v47 }
  0x5f   : > { %613 = vmatprep.mubr.f32.mxu0 %v1997_v7 }
  0x60   : > { %769 = vmatmul.mubr.f32.gmra.mrb[24].mxu1 %v381_v47 }
  0x61   : > { %774 = vmatprep.mubr.f32.mxu1 %v1997_v7 }
  0x62   : > { %614 = vmatmul.mubr.f32.gmra.mrb[26].mxu0 %v382_v48 }
  0x63   : > { %619 = vmatprep.mubr.f32.mxu0 %v1997_v7 }
  0x64   : > { %775 = vmatmul.mubr.f32.gmra.mrb[26].mxu1 %v382_v48 }
  0x65   : > { %780 = vmatprep.mubr.f32.mxu1 %v1997_v7 }
  0x66   : > { %620 = vmatmul.mubr.f32.gmra.mrb[28].mxu0 %v383_v49 }
  0x67   : > { %625 = vmatprep.mubr.f32.mxu0 %v1997_v7 }
  0x68   : > { %781 = vmatmul.mubr.f32.gmra.mrb[28].mxu1 %v383_v49 }
  0x69   : > { %786 = vmatprep.mubr.f32.mxu1 %v1997_v7  ;;  %v798_v7 = vld [vmem:[%s2334_s10 + $0x28] sm:$0xff]  ;;  %s2589_s10 = scalar_lea.vmem (%p2068_p4), %s2690_s8, %s1590_s25  }
  0x6a   : > { %626 = vmatmul.mubr.f32.gmra.mrb[30].mxu0 %v384_v50 }
  0x6b   : > { %1644 = vmatprep.mubr.msk.f32.mxu0 %vm817_vm0, %v793_v51 }
  0x6c   : > { %787 = vmatmul.mubr.f32.gmra.mrb[30].mxu1 %v384_v50 }
  0x6e   : > { %1645 = vmatmul.mubr.msk.f32.vlgmr.msra.gmra.mrb[32].mxu0 %vm817_vm0, %v794_v52 }
  0x6f   : > { %1647 = vmatprep.mubr.msk.f32.mxu0 %vm817_vm0, %v795_v53 }
  0x72   : > { %1648 = vmatmul.mubr.msk.f32.gmra.mrb[34].mxu0 %vm817_vm0, %v796_v54 }
  0x73   : > { %1650 = vmatprep.mubr.msk.f32.mxu0 %vm817_vm0, %v797_v55 }
  0x76   : > { %1651 = vmatmul.mubr.msk.f32.gmra.mrb[36].mxu0 %vm817_vm0, %v798_v7 }
  0x77   : > { %1653 = vmatprep.mubr.msk.f32.mxu0 %vm817_vm0, %v799_v56 }
  0x7a   : > { %1654 = vmatmul.mubr.msk.f32.gmra.mrb[38].mxu0 %vm817_vm0, %v800_v57 }
  0x7b   : > { %1656 = vmatprep.mubr.msk.f32.mxu0 %vm817_vm0, %v801_v58 }
  0x7e   : > { %1657 = vmatmul.mubr.msk.f32.gmra.mrb[40].mxu0 %vm817_vm0, %v802_v59 }
  0x7f   : > { %1659 = vmatprep.mubr.msk.f32.mxu0 %vm817_vm0, %v803_v60 }
  0x82   : > { %1660 = vmatmul.mubr.msk.f32.gmra.mrb[42].mxu0 %vm817_vm0, %v804_v61 }
  0x83   : > { %1662 = vmatprep.mubr.msk.f32.mxu0 %vm817_vm0, %v805_v62 }
  0x86   : > { %1663 = vmatmul.mubr.msk.f32.gmra.mrb[44].mxu0 %vm817_vm0, %v806_v63 }
  0x87   : > { %1665 = vmatprep.mubr.msk.f32.mxu0 %vm817_vm0, %v807_v0 }
  0x8a   : > { %1666 = vmatmul.mubr.msk.f32.gmra.mrb[46].mxu0 %vm817_vm0, %v808_v1 }
 0x101   : > { %v537_v37 = vpop.f32.mrb[0].mxu0 }
 0x102   : > { %v538_v39 = vadd.f32 %v537_v37, %v2422_v34  ;;  %v539_v40 = vpop.f32.mrb[1].mxu0 }
 0x103   : > { %v540_v41 = vadd.f32 %v539_v40, %v2424_v35  ;;  %v698_v42 = vpop.f32.mrb[0].mxu1 }
 0x104   : > { %v699_v43 = vadd.f32 %v698_v42, %v2426_v36  ;;  %v700_v44 = vpop.f32.mrb[1].mxu1 }
 0x105   : > { %v1011_v45 = vmul.f32 %v540_v41, %v538_v39  ;;  %v543_v46 = vpop.f32.mrb[2].mxu0  ;;  %v701_v47 = vadd.f32 %v700_v44, %v2428_v38 }
 0x106   : > { %v544_v48 = vadd.f32 %v543_v46, %v2422_v34  ;;  %v545_v49 = vpop.f32.mrb[3].mxu0 }
 0x107   : > { %v1027_v50 = vmul.f32 %v1011_v45, %v699_v43  ;;  %v546_v51 = vadd.f32 %v545_v49, %v2424_v35  ;;  %v704_v52 = vpop.f32.mrb[2].mxu1 }
 0x108   : > { %v705_v53 = vadd.f32 %v704_v52, %v2426_v36  ;;  %v706_v54 = vpop.f32.mrb[3].mxu1 }
 0x109   : > { %v1012_v55 = vmul.f32 %v546_v51, %v544_v48  ;;  %v2437_v7 = vmul.f32 %v1027_v50, %v701_v47  ;;  %v549_v56 = vpop.f32.mrb[4].mxu0  ;;  %v707_v57 = vadd.f32 %v706_v54, %v2428_v38 }
 0x10a   : > { %v550_v58 = vadd.f32 %v549_v56, %v2422_v34  ;;  %v551_v59 = vpop.f32.mrb[5].mxu0 }
 0x10b   : > { %v1028_v60 = vmul.f32 %v1012_v55, %v705_v53  ;;  %v552_v61 = vadd.f32 %v551_v59, %v2424_v35  ;;  %v710_v62 = vpop.f32.mrb[4].mxu1 }
 0x10c   : > { %v711_v63 = vadd.f32 %v710_v62, %v2426_v36  ;;  %v712_v0 = vpop.f32.mrb[5].mxu1 }
 0x10d   : > { %v1013_v1 = vmul.f32 %v552_v61, %v550_v58  ;;  %v2443_v2 = vmul.f32 %v1028_v60, %v707_v57  ;;  %v555_v3 = vpop.f32.mrb[6].mxu0  ;;  %v713_v4 = vadd.f32 %v712_v0, %v2428_v38 }
 0x10e   : > { %v556_v5 = vadd.f32 %v555_v3, %v2422_v34  ;;  %v557_v6 = vpop.f32.mrb[7].mxu0 }
 0x10f   : > { %v1029_v8 = vmul.f32 %v1013_v1, %v711_v63  ;;  %v558_v9 = vadd.f32 %v557_v6, %v2424_v35  ;;  %v716_v10 = vpop.f32.mrb[6].mxu1 }
 0x110   : > { %v717_v11 = vadd.f32 %v716_v10, %v2426_v36  ;;  %v718_v12 = vpop.f32.mrb[7].mxu1 }
 0x111   : > { %v1014_v13 = vmul.f32 %v558_v9, %v556_v5  ;;  %v2449_v14 = vmul.f32 %v1029_v8, %v713_v4  ;;  %v561_v15 = vpop.f32.mrb[8].mxu0  ;;  %v719_v16 = vadd.f32 %v718_v12, %v2428_v38 }
 0x112   : > { %v562_v17 = vadd.f32 %v561_v15, %v2422_v34  ;;  %v563_v18 = vpop.f32.mrb[9].mxu0 }
 0x113   : > { %v1030_v19 = vmul.f32 %v1014_v13, %v717_v11  ;;  %v564_v20 = vadd.f32 %v563_v18, %v2424_v35  ;;  %v722_v21 = vpop.f32.mrb[8].mxu1 }
 0x114   : > { %v723_v22 = vadd.f32 %v722_v21, %v2426_v36  ;;  %v724_v23 = vpop.f32.mrb[9].mxu1 }
 0x115   : > { %v1015_v24 = vmul.f32 %v564_v20, %v562_v17  ;;  %v2455_v25 = vmul.f32 %v1030_v19, %v719_v16  ;;  %v567_v26 = vpop.f32.mrb[10].mxu0  ;;  %v725_v27 = vadd.f32 %v724_v23, %v2428_v38 }
 0x116   : > { %v568_v28 = vadd.f32 %v567_v26, %v2422_v34  ;;  %v569_v29 = vpop.f32.mrb[11].mxu0 }
 0x117   : > { %v1031_v30 = vmul.f32 %v1015_v24, %v723_v22  ;;  %v570_v31 = vadd.f32 %v569_v29, %v2424_v35  ;;  %v728_v32 = vpop.f32.mrb[10].mxu1 }
 0x118   : > { %v729_v33 = vadd.f32 %v728_v32, %v2426_v36  ;;  %v730_v37 = vpop.f32.mrb[11].mxu1 }
 0x119   : > { %v1016_v39 = vmul.f32 %v570_v31, %v568_v28  ;;  %v2461_v40 = vmul.f32 %v1031_v30, %v725_v27  ;;  %v573_v41 = vpop.f32.mrb[12].mxu0  ;;  %v731_v42 = vadd.f32 %v730_v37, %v2428_v38 }
 0x11a   : > { %v574_v43 = vadd.f32 %v573_v41, %v2422_v34  ;;  %v575_v44 = vpop.f32.mrb[13].mxu0 }
 0x11b   : > { %v1032_v45 = vmul.f32 %v1016_v39, %v729_v33  ;;  %v576_v46 = vadd.f32 %v575_v44, %v2424_v35  ;;  %v734_v47 = vpop.f32.mrb[12].mxu1 }
 0x11c   : > { %v735_v48 = vadd.f32 %v734_v47, %v2426_v36  ;;  %v736_v49 = vpop.f32.mrb[13].mxu1 }
 0x11d   : > { %v1017_v50 = vmul.f32 %v576_v46, %v574_v43  ;;  %v2467_v51 = vmul.f32 %v1032_v45, %v731_v42  ;;  %v579_v52 = vpop.f32.mrb[14].mxu0  ;;  %v737_v53 = vadd.f32 %v736_v49, %v2428_v38 }
 0x11e   : > { %v580_v54 = vadd.f32 %v579_v52, %v2422_v34  ;;  %v581_v55 = vpop.f32.mrb[15].mxu0 }
 0x11f   : > { %v1033_v56 = vmul.f32 %v1017_v50, %v735_v48  ;;  %v582_v57 = vadd.f32 %v581_v55, %v2424_v35  ;;  %v740_v58 = vpop.f32.mrb[14].mxu1 }
 0x120   : > { %v741_v59 = vadd.f32 %v740_v58, %v2426_v36  ;;  %v742_v60 = vpop.f32.mrb[15].mxu1 }
 0x121   : > { %v1018_v61 = vmul.f32 %v582_v57, %v580_v54  ;;  %v2473_v62 = vmul.f32 %v1033_v56, %v737_v53  ;;  %v585_v63 = vpop.f32.mrb[16].mxu0  ;;  %v743_v0 = vadd.f32 %v742_v60, %v2428_v38 }
 0x122   : > { %v586_v1 = vadd.f32 %v585_v63, %v2422_v34  ;;  %v587_v3 = vpop.f32.mrb[17].mxu0 }
 0x123   : > { %v1034_v4 = vmul.f32 %v1018_v61, %v741_v59  ;;  %v588_v5 = vadd.f32 %v587_v3, %v2424_v35  ;;  %v746_v6 = vpop.f32.mrb[16].mxu1 }
 0x124   : > { %v747_v8 = vadd.f32 %v746_v6, %v2426_v36  ;;  %v748_v9 = vpop.f32.mrb[17].mxu1 }
 0x125   : > { %v1019_v10 = vmul.f32 %v588_v5, %v586_v1  ;;  %v2479_v11 = vmul.f32 %v1034_v4, %v743_v0  ;;  %v591_v12 = vpop.f32.mrb[18].mxu0  ;;  %v749_v13 = vadd.f32 %v748_v9, %v2428_v38 }
 0x126   : > { %v592_v15 = vadd.f32 %v591_v12, %v2422_v34  ;;  %v593_v16 = vpop.f32.mrb[19].mxu0 }
 0x127   : > { %v1035_v17 = vmul.f32 %v1019_v10, %v747_v8  ;;  %v594_v18 = vadd.f32 %v593_v16, %v2424_v35  ;;  %v752_v19 = vpop.f32.mrb[18].mxu1 }
 0x128   : > { %v753_v20 = vadd.f32 %v752_v19, %v2426_v36  ;;  %v754_v21 = vpop.f32.mrb[19].mxu1 }
 0x129   : > { %v1020_v22 = vmul.f32 %v594_v18, %v592_v15  ;;  %v2485_v23 = vmul.f32 %v1035_v17, %v749_v13  ;;  %v597_v24 = vpop.f32.mrb[20].mxu0  ;;  %v755_v26 = vadd.f32 %v754_v21, %v2428_v38 }
 0x12a   : > { %v598_v27 = vadd.f32 %v597_v24, %v2422_v34  ;;  %v599_v28 = vpop.f32.mrb[21].mxu0 }
 0x12b   : > { %v1036_v29 = vmul.f32 %v1020_v22, %v753_v20  ;;  %v600_v30 = vadd.f32 %v599_v28, %v2424_v35  ;;  %v758_v31 = vpop.f32.mrb[20].mxu1 }
 0x12c   : > { %v759_v32 = vadd.f32 %v758_v31, %v2426_v36  ;;  %v760_v33 = vpop.f32.mrb[21].mxu1 }
 0x12d   : > { %v1021_v37 = vmul.f32 %v600_v30, %v598_v27  ;;  %v2491_v39 = vmul.f32 %v1036_v29, %v755_v26  ;;  %v603_v41 = vpop.f32.mrb[22].mxu0  ;;  %v761_v42 = vadd.f32 %v760_v33, %v2428_v38 }
 0x12e   : > { %v604_v43 = vadd.f32 %v603_v41, %v2422_v34  ;;  %v605_v44 = vpop.f32.mrb[23].mxu0 }
 0x12f   : > { %v1037_v45 = vmul.f32 %v1021_v37, %v759_v32  ;;  %v606_v46 = vadd.f32 %v605_v44, %v2424_v35  ;;  %v764_v47 = vpop.f32.mrb[22].mxu1 }
 0x130   : > { %v765_v48 = vadd.f32 %v764_v47, %v2426_v36  ;;  %v766_v49 = vpop.f32.mrb[23].mxu1 }
 0x131   : > { %v1022_v50 = vmul.f32 %v606_v46, %v604_v43  ;;  %v2497_v52 = vmul.f32 %v1037_v45, %v761_v42  ;;  %v609_v53 = vpop.f32.mrb[24].mxu0  ;;  %v767_v54 = vadd.f32 %v766_v49, %v2428_v38  ;;  %v2523_v42 = vld [vmem:[%s2687_s5] ss:$0 sm:$0xff] }
 0x132   : > { %v610_v55 = vadd.f32 %v609_v53, %v2422_v34  ;;  %v611_v56 = vpop.f32.mrb[25].mxu0 }
 0x133   : > { %v1038_v57 = vmul.f32 %v1022_v50, %v765_v48  ;;  %v612_v58 = vadd.f32 %v611_v56, %v2424_v35  ;;  %v770_v59 = vpop.f32.mrb[24].mxu1 }
 0x134   : > { %v771_v60 = vadd.f32 %v770_v59, %v2426_v36  ;;  %v772_v61 = vpop.f32.mrb[25].mxu1 }
 0x135   : > { %v1023_v63 = vmul.f32 %v612_v58, %v610_v55  ;;  %v2503_v0 = vmul.f32 %v1038_v57, %v767_v54  ;;  %v615_v1 = vpop.f32.mrb[26].mxu0  ;;  %v773_v3 = vadd.f32 %v772_v61, %v2428_v38 }
 0x136   : > { %v616_v4 = vadd.f32 %v615_v1, %v2422_v34  ;;  %v617_v5 = vpop.f32.mrb[27].mxu0 }
 0x137   : > { %v1039_v6 = vmul.f32 %v1023_v63, %v771_v60  ;;  %v618_v8 = vadd.f32 %v617_v5, %v2424_v35  ;;  %v776_v9 = vpop.f32.mrb[26].mxu1 }
 0x138   : > { %v777_v10 = vadd.f32 %v776_v9, %v2426_v36  ;;  %v778_v12 = vpop.f32.mrb[27].mxu1 }
 0x139   : > { %v1024_v13 = vmul.f32 %v618_v8, %v616_v4  ;;  %v2509_v15 = vmul.f32 %v1039_v6, %v773_v3  ;;  %v621_v16 = vpop.f32.mrb[28].mxu0  ;;  %v779_v17 = vadd.f32 %v778_v12, %v2428_v38 }
 0x13a   : > { %v622_v18 = vadd.f32 %v621_v16, %v2422_v34  ;;  %v623_v19 = vpop.f32.mrb[29].mxu0 }
 0x13b   : > { %v1040_v20 = vmul.f32 %v1024_v13, %v777_v10  ;;  %v624_v21 = vadd.f32 %v623_v19, %v2424_v35  ;;  %v782_v22 = vpop.f32.mrb[28].mxu1 }
 0x13c   : > { %v783_v24 = vadd.f32 %v782_v22, %v2426_v36  ;;  %v784_v26 = vpop.f32.mrb[29].mxu1 }
 0x13d   : > { %v1025_v27 = vmul.f32 %v624_v21, %v622_v18  ;;  %v2515_v28 = vmul.f32 %v1040_v20, %v779_v17  ;;  %v627_v29 = vpop.f32.mrb[30].mxu0  ;;  %v785_v30 = vadd.f32 %v784_v26, %v2428_v38 }
 0x13e   : > { %v628_v31 = vadd.f32 %v627_v29, %v2422_v34  ;;  %v629_v32 = vpop.f32.mrb[31].mxu0 }
 0x13f   : > { %v1041_v33 = vmul.f32 %v1025_v27, %v783_v24  ;;  %v630_v37 = vadd.f32 %v629_v32, %v2424_v35  ;;  %v788_v41 = vpop.f32.mrb[30].mxu1 }
 0x140   : > { %v789_v43 = vadd.f32 %v788_v41, %v2426_v36  ;;  %v790_v44 = vpop.f32.mrb[31].mxu1 }
 0x141   : > { %v1026_v45 = vmul.f32 %v630_v37, %v628_v31  ;;  %v2526_v46 = vmul.f32 %v1041_v33, %v785_v30  ;;  %v1646_v47 = vpop.f32.mrb[32].mxu0  ;;  %v791_v48 = vadd.f32 %v790_v44, %v2428_v38 }
 0x142   : > { %v938_v34 = vadd.f32 %v1646_v47, %v2523_v42  ;;  %v932_v49 = vpop.f32.mrb[33].mxu0 }
 0x143   : > { %v1042_v50 = vmul.f32 %v1026_v45, %v789_v43  ;;  %v933_v35 = vadd.f32 %v2523_v42, %v932_v49 }
 0x144   : > { %v1060_v53 = vmul.f32 %v2443_v2, %v938_v34 }
 0x145   : > { %v1058_v54 = vmul.f32 %v1042_v50, %v791_v48  ;;  %v1059_v55 = vmul.f32 %v2437_v7, %v933_v35  ;;  %v1649_v56 = vpop.f32.mrb[34].mxu0 }
 0x146   : > { %v948_v36 = vadd.f32 %v1649_v56, %v2523_v42  ;;  %v942_v57 = vpop.f32.mrb[35].mxu0 }
 0x147   : > { %v943_v58 = vadd.f32 %v2523_v42, %v942_v57  ;;  %1700 = vmatprep.mubr.f32.mxu1 %v1059_v55 }
 0x148   : > { %v1062_v38 = vmul.f32 %v2455_v25, %v948_v36  ;;  %1701 = vmatmul.mubr.f32.vlgmr.msra.gmra.mrb[32].mxu1 %v1060_v53 }
 0x149   : > { %v1061_v59 = vmul.f32 %v2449_v14, %v943_v58  ;;  %v1652_v60 = vpop.f32.mrb[36].mxu0 }
 0x14a   : > { %v958_v61 = vadd.f32 %v1652_v60, %v2523_v42  ;;  %v952_v63 = vpop.f32.mrb[37].mxu0 }
 0x14b   : > { %v953_v2 = vadd.f32 %v2523_v42, %v952_v63  ;;  %1703 = vmatprep.mubr.f32.mxu1 %v1061_v59 }
 0x14c   : > { %v1064_v7 = vmul.f32 %v2467_v51, %v958_v61  ;;  %1704 = vmatmul.mubr.f32.gmra.mrb[34].mxu1 %v1062_v38 }
 0x14d   : > { %v1063_v1 = vmul.f32 %v2461_v40, %v953_v2  ;;  %v1655_v3 = vpop.f32.mrb[38].mxu0 }
 0x14e   : > { %v968_v4 = vadd.f32 %v1655_v3, %v2523_v42  ;;  %v962_v5 = vpop.f32.mrb[39].mxu0 }
 0x14f   : > { %v963_v25 = vadd.f32 %v2523_v42, %v962_v5  ;;  %1706 = vmatprep.mubr.f32.mxu1 %v1063_v1 }
 0x150   : > { %v1066_v14 = vmul.f32 %v2479_v11, %v968_v4  ;;  %1707 = vmatmul.mubr.f32.gmra.mrb[36].mxu1 %v1064_v7 }
 0x151   : > { %v1065_v6 = vmul.f32 %v2473_v62, %v963_v25  ;;  %v1658_v8 = vpop.f32.mrb[40].mxu0 }
 0x152   : > { %v978_v9 = vadd.f32 %v1658_v8, %v2523_v42  ;;  %v972_v10 = vpop.f32.mrb[41].mxu0 }
 0x153   : > { %v973_v51 = vadd.f32 %v2523_v42, %v972_v10  ;;  %1709 = vmatprep.mubr.f32.mxu1 %v1065_v6 }
 0x154   : > { %v1068_v40 = vmul.f32 %v2491_v39, %v978_v9  ;;  %1710 = vmatmul.mubr.f32.gmra.mrb[38].mxu1 %v1066_v14 }
 0x155   : > { %v1067_v12 = vmul.f32 %v2485_v23, %v973_v51  ;;  %v1661_v13 = vpop.f32.mrb[42].mxu0 }
 0x156   : > { %v988_v16 = vadd.f32 %v1661_v13, %v2523_v42  ;;  %v982_v17 = vpop.f32.mrb[43].mxu0 }
 0x157   : > { %v983_v11 = vadd.f32 %v2523_v42, %v982_v17  ;;  %1712 = vmatprep.mubr.f32.mxu1 %v1067_v12 }
 0x158   : > { %v1070_v62 = vmul.f32 %v2503_v0, %v988_v16  ;;  %1713 = vmatmul.mubr.f32.gmra.mrb[40].mxu1 %v1068_v40 }
 0x159   : > { %v1069_v18 = vmul.f32 %v2497_v52, %v983_v11  ;;  %v1664_v19 = vpop.f32.mrb[44].mxu0 }
 0x15a   : > { %v998_v20 = vadd.f32 %v1664_v19, %v2523_v42  ;;  %v992_v21 = vpop.f32.mrb[45].mxu0 }
 0x15b   : > { %v993_v39 = vadd.f32 %v2523_v42, %v992_v21  ;;  %1715 = vmatprep.mubr.f32.mxu1 %v1069_v18 }
 0x15c   : > { %v1072_v23 = vmul.f32 %v2515_v28, %v998_v20  ;;  %1716 = vmatmul.mubr.f32.gmra.mrb[42].mxu1 %v1070_v62  ;;  %v1572_v28 = vld [vmem:[%s2689_s7] ss:$0 sm:$0xff] }
 0x15d   : > { %v1071_v22 = vmul.f32 %v2509_v15, %v993_v39  ;;  %v1667_v24 = vpop.f32.mrb[46].mxu0 }
 0x15e   : > { %v1008_v26 = vadd.f32 %v1667_v24, %v2523_v42  ;;  %v1002_v0 = vpop.f32.mrb[47].mxu0 }
 0x15f   : > { %v1003_v27 = vadd.f32 %v2523_v42, %v1002_v0  ;;  %1718 = vmatprep.mubr.f32.mxu1 %v1071_v22 }
 0x160   : > { %v1074_v52 = vmul.f32 %v1058_v54, %v1008_v26  ;;  %1719 = vmatmul.mubr.f32.gmra.mrb[44].mxu1 %v1072_v23 }
 0x161   : > { %v1073_v29 = vmul.f32 %v2526_v46, %v1003_v27 }
 0x163   : > { %1721 = vmatprep.mubr.f32.mxu1 %v1073_v29 }
 0x164   : > { %1722 = vmatmul.mubr.f32.gmra.mrb[46].mxu1 %v1074_v52 }
 0x21b   : > { %v1702_v15 = vpop.f32.mrb[32].mxu1 }
 0x21c   : > { %v1170_v30 = vadd.f32 %v1702_v15, %v1572_v28  ;;  %v1164_v31 = vpop.f32.mrb[33].mxu1 }
 0x21d   : > { %v1165_v32 = vadd.f32 %v1572_v28, %v1164_v31 }
 0x21e   : > { %1244 = vst [vmem:[%s2564_s24 + $0x8] sm:$0xff] %v1170_v30 }
 0x21f   : > { %1243 = vst [vmem:[%s2564_s24] sm:$0xff] %v1165_v32  ;;  %v1705_v33 = vpop.f32.mrb[34].mxu1 }
 0x220   : > { %v1180_v37 = vadd.f32 %v1705_v33, %v1572_v28  ;;  %v1174_v41 = vpop.f32.mrb[35].mxu1 }
 0x221   : > { %v1175_v42 = vadd.f32 %v1572_v28, %v1174_v41 }
 0x222   : > { %1246 = vst [vmem:[%s2564_s24 + $0x18] sm:$0xff] %v1180_v37 }
 0x223   : > { %1245 = vst [vmem:[%s2564_s24 + $0x10] sm:$0xff] %v1175_v42  ;;  %v1708_v43 = vpop.f32.mrb[36].mxu1 }
 0x224   : > { %v1190_v44 = vadd.f32 %v1708_v43, %v1572_v28  ;;  %v1184_v45 = vpop.f32.mrb[37].mxu1 }
 0x225   : > { %v1185_v46 = vadd.f32 %v1572_v28, %v1184_v45 }
 0x226   : > { %1248 = vst [vmem:[%s2564_s24 + $0x28] sm:$0xff] %v1190_v44 }
 0x227   : > { %1247 = vst [vmem:[%s2564_s24 + $0x20] sm:$0xff] %v1185_v46  ;;  %v1711_v47 = vpop.f32.mrb[38].mxu1 }
 0x228   : > { %v1200_v48 = vadd.f32 %v1711_v47, %v1572_v28  ;;  %v1194_v34 = vpop.f32.mrb[39].mxu1 }
 0x229   : > { %v1195_v49 = vadd.f32 %v1572_v28, %v1194_v34 }
 0x22a   : > { %1250 = vst [vmem:[%s2564_s24 + $0x38] sm:$0xff] %v1200_v48 }
 0x22b   : > { %1249 = vst [vmem:[%s2564_s24 + $0x30] sm:$0xff] %v1195_v49  ;;  %v1714_v50 = vpop.f32.mrb[40].mxu1 }
 0x22c   : > { %v1210_v35 = vadd.f32 %v1714_v50, %v1572_v28  ;;  %v1204_v53 = vpop.f32.mrb[41].mxu1 }
 0x22d   : > { %v1205_v54 = vadd.f32 %v1572_v28, %v1204_v53 }
 0x22e   : > { %1252 = vst [vmem:[%s2564_s24 + $0x48] sm:$0xff] %v1210_v35 }
 0x22f   : > { %1251 = vst [vmem:[%s2564_s24 + $0x40] sm:$0xff] %v1205_v54  ;;  %v1717_v55 = vpop.f32.mrb[42].mxu1 }
 0x230   : > { %v1220_v56 = vadd.f32 %v1717_v55, %v1572_v28  ;;  %v1214_v36 = vpop.f32.mrb[43].mxu1 }
 0x231   : > { %v1215_v57 = vadd.f32 %v1572_v28, %v1214_v36 }
 0x232   : > { %1254 = vst [vmem:[%s2564_s24 + $0x58] sm:$0xff] %v1220_v56 }
 0x233   : > { %1253 = vst [vmem:[%s2564_s24 + $0x50] sm:$0xff] %v1215_v57  ;;  %v1720_v58 = vpop.f32.mrb[44].mxu1 }
 0x234   : > { %v1230_v38 = vadd.f32 %v1720_v58, %v1572_v28  ;;  %v1224_v59 = vpop.f32.mrb[45].mxu1 }
 0x235   : > { %v1225_v60 = vadd.f32 %v1572_v28, %v1224_v59  ;;  %1265 = sbr.rel (!%p2068_p4) target bundleno = 621 (0x26d), region = 56 }
 0x236   : > { %1256 = vst [vmem:[%s2564_s24 + $0x68] sm:$0xff] %v1230_v38 }
 0x237   : > { %1255 = vst [vmem:[%s2564_s24 + $0x60] sm:$0xff] %v1225_v60  ;;  %v1723_v61 = vpop.f32.mrb[46].mxu1 }
 0x238   : > { %v1240_v63 = vadd.f32 %v1723_v61, %v1572_v28  ;;  %v1234_v2 = vpop.f32.mrb[47].mxu1 }
 0x239   : > { %v1235_v7 = vadd.f32 %v1572_v28, %v1234_v2 }
 0x23a   : > { %1258 = vst [vmem:[%s2564_s24 + $0x78] sm:$0xff] %v1240_v63 }
 0x23b   : > { %1257 = vst [vmem:[%s2564_s24 + $0x70] sm:$0xff] %v1235_v7 }
 0x23c   : > { %s2699_s27 = smov (!%p1268_p8, %s1267_s27), 16 }
 0x23d   : > { %s1575_s16 = sshll.u32 %s2699_s27, 7 }
 0x23e   : > { %p1578_p9 = scmp.eq.s32.totalorder %s1575_s16, 0 }
 0x23f   : > { %s2595_s11 = sshrl.u32 (!%p1578_p9), %s2699_s27, 4 }
 0x240   : > { %1276 = sbr.rel (%p1578_p9) target bundleno = 621 (0x26d), region = 60  ;;  %p1579_p10 = scmp.le.s32.totalorder (!%p1578_p9), %s2595_s11, 0 }
 0x247   : > { %1496 = sbr.rel (%p1579_p10) target bundleno = 600 (0x258), region = 139  ;;  %s2692_s30 = smov (!%p1579_p10), %s2589_s10 }
 0x248   : > { %s2693_s13 = smov (!%p1579_p10), %s2564_s24  ;;  %s2604_s18 = smov (!%p1579_p10), 0  }
 0x249   : > { %s2606_s14 = smov (!%p1579_p10), 0  }
 0x24e LB: >> { %v1368_v1 = vld [vmem:[%s1971_s13] sm:$0xff]  ;;  %v1370_v3 = vld [vmem:[%s1971_s13 + $0x8] sm:$0xff]  ;;  %v1372_v4 = vld [vmem:[%s1971_s13 + $0x10] sm:$0xff]  ;;  %s1400_s15 = sadd.s32 1, %s1975_s18  ;;  %s1362_s14 = sadd.s32 1, %s1979_s14   ;;  %s1979_s14 = sphi %s2606_s14, %s1362_s14   ;;  %s1975_s18 = sphi %s2604_s18, %s2694_s18   ;;  %s1971_s13 = sphi %s2693_s13, %s1405_s13   ;;  %s1967_s30 = sphi %s2692_s30, %s1406_s30  }
 0x24f   : >> { %1369 = vst [vmem:[%s1967_s30] sm:$0xff] %v1368_v1  ;;  %1371 = vst [vmem:[%s1967_s30 + $0x8] sm:$0xff] %v1370_v3  ;;  %v1374_v5 = vld [vmem:[%s1971_s13 + $0x18] sm:$0xff]  ;;  %v1376_v25 = vld [vmem:[%s1971_s13 + $0x20] sm:$0xff]  ;;  %p1401_p11 = scmp.ge.s32.totalorder %s1400_s15, %s2595_s11  ;;  %p1361_p12 = scmp.ge.s32.totalorder %s1362_s14, %s2595_s11 }
 0x250   : >> { %1373 = vst [vmem:[%s1967_s30 + $0x10] sm:$0xff] %v1372_v4  ;;  %v1378_v14 = vld [vmem:[%s1971_s13 + $0x28] sm:$0xff]  ;;  %1375 = vst [vmem:[%s1967_s30 + $0x18] sm:$0xff] %v1374_v5  ;;  %v1380_v6 = vld [vmem:[%s1971_s13 + $0x30] sm:$0xff] }
 0x251   : >> { %1377 = vst [vmem:[%s1967_s30 + $0x20] sm:$0xff] %v1376_v25  ;;  %1379 = vst [vmem:[%s1967_s30 + $0x28] sm:$0xff] %v1378_v14  ;;  %v1382_v8 = vld [vmem:[%s1971_s13 + $0x38] sm:$0xff]  ;;  %v1384_v9 = vld [vmem:[%s1971_s13 + $0x40] sm:$0xff]  ;;  %s2701_s15 = smov (%p1401_p11, %s1400_s15), 0  ;;  %1364 = sbr.rel (!%p1361_p12) target bundleno = 590 (0x24e), region = 145 }
 0x252   : >> { %1381 = vst [vmem:[%s1967_s30 + $0x30] sm:$0xff] %v1380_v6  ;;  %1383 = vst [vmem:[%s1967_s30 + $0x38] sm:$0xff] %v1382_v8  ;;  %v1386_v10 = vld [vmem:[%s1971_s13 + $0x48] sm:$0xff]  ;;  %v1388_v51 = vld [vmem:[%s1971_s13 + $0x50] sm:$0xff]  ;;  %s1580_s17 = sshll.u32 %s2701_s15, 7  ;;  %s2694_s18 = smov %s2701_s15 }
 0x253   : >> { %1385 = vst [vmem:[%s1967_s30 + $0x40] sm:$0xff] %v1384_v9  ;;  %v1390_v40 = vld [vmem:[%s1971_s13 + $0x58] sm:$0xff]  ;;  %1387 = vst [vmem:[%s1967_s30 + $0x48] sm:$0xff] %v1386_v10  ;;  %v1392_v12 = vld [vmem:[%s1971_s13 + $0x60] sm:$0xff] }
 0x254   : >> { %1389 = vst [vmem:[%s1967_s30 + $0x50] sm:$0xff] %v1388_v51  ;;  %1391 = vst [vmem:[%s1967_s30 + $0x58] sm:$0xff] %v1390_v40  ;;  %v1394_v13 = vld [vmem:[%s1971_s13 + $0x68] sm:$0xff]  ;;  %v1396_v16 = vld [vmem:[%s1971_s13 + $0x70] sm:$0xff] }
 0x255   : >> { %1393 = vst [vmem:[%s1967_s30 + $0x60] sm:$0xff] %v1392_v12  ;;  %1395 = vst [vmem:[%s1967_s30 + $0x68] sm:$0xff] %v1394_v13  ;;  %v1398_v17 = vld [vmem:[%s1971_s13 + $0x78] sm:$0xff]  ;;  %s1405_s13 = scalar_lea.vmem %s2564_s24, %s1580_s17 [#allocation2]  }
 0x256   : >> { %1397 = vst [vmem:[%s1967_s30 + $0x70] sm:$0xff] %v1396_v16  ;;  %1399 = vst [vmem:[%s1967_s30 + $0x78] sm:$0xff] %v1398_v17  ;;  %s1406_s30 = scalar_lea.vmem %s2589_s10, %s1580_s17  }
 0x258 PF: > { %s2664_s19 = sand.u32 15, %s2699_s27   ;;  %s1591_s20 = sshll.u32 %s2595_s11, 7 }
 0x259   : > { %s1411_s21 = scalar_lea.vmem %s2564_s24, %s1591_s20 [#allocation2]   ;;  %s1413_s22 = scalar_lea.vmem %s2589_s10, %s1591_s20  }
 0x25a   : > { %p1585_p13 = scmp.le.s32.totalorder %s2664_s19, 0 }
 0x25b   : > { %s1981_s23 = smov (!%p1585_p13), %s1413_s22   ;;  %s1985_s25 = smov (!%p1585_p13), %s1411_s21  }
 0x25c   : > { %1510 = sbr.rel (%p1585_p13) target bundleno = 621 (0x26d), region = 150  ;;  %s1989_s26 = smov (!%p1585_p13), 0  }
 0x25d   : > { %s1993_s29 = smov (!%p1585_p13), 0  }
 0x263 LB: >> { %v1423_v11 = vld [vmem:[%s1987_s25] sm:$0xff]  ;;  %s1425_s27 = sadd.s32 1, %s1991_s26  ;;  %s1417_s29 = sadd.s32 1, %s1995_s29   ;;  %s1995_s29 = sphi %s1993_s29, %s1417_s29   ;;  %s1991_s26 = sphi %s1989_s26, %s1990_s26   ;;  %s1987_s25 = sphi %s1985_s25, %s1430_s25   ;;  %s1983_s23 = sphi %s1981_s23, %s1431_s23  }
 0x264   : >> { %1424 = vst [vmem:[%s1983_s23] sm:$0xff] %v1423_v11  ;;  %p1426_p0 = scmp.ge.s32.totalorder %s1425_s27, %s2664_s19  ;;  %p1416_p1 = scmp.ge.s32.totalorder %s1417_s29, %s2664_s19 }
 0x266   : >> { %s2703_s27 = smov (%p1426_p0, %s1425_s27), 0  ;;  %1419 = sbr.rel (!%p1416_p1) target bundleno = 611 (0x263), region = 156 }
 0x267   : >> { %s1586_s24 = sshll.u32 %s2703_s27, 3  ;;  %s1990_s26 = smov %s2703_s27  }
 0x268   : >> { %s1430_s25 = scalar_lea.vmem %s1411_s21, %s1586_s24 [#allocation2]   ;;  %s1431_s23 = scalar_lea.vmem %s1413_s22, %s1586_s24  }
 0x26d PF: > { %p15_p2 = scmp.ge.s32.totalorder %s2058_s9, 4   ;;  %s2695_s27 = smov %s1959_s28 }
 0x26e   : > { %s2696_s28 = smov %s2066_s12  ;;  %s2697_s29 = smov %s2058_s9 }
 0x26f   :  { %17 = sbr.rel (!%p15_p2) target bundleno = 2 (0x2), region = 167 }

</bundles_post_ra>
